<compile_context>
chip_gen: v5e
topology: v5e:2x2
jax: 0.10.0
libtpu: 0.0.40
codegen_flags: <defaults>
</compile_context>

<pallas_src>
import jax
import jax.numpy as jnp
from jax import lax
from jax.experimental import pallas as pl
from jax.experimental.pallas import tpu as pltpu


def _mlp_kernel(x_ref, w_ref, b_ref, o_ref):
    # x_ref: (1, C, t_hw)  -- channels in sublanes, tokens in lanes
    # w_ref: (D, C)        -- resident nn.Linear weight (no wrapper transpose)
    # b_ref: (1, D) f32    -- resident bias
    # o_ref: (1, t_hw, D)
    x = x_ref[0]  # (C, t_hw)
    # Contract C (axis 0 of x) against C (axis 1 of w): result (t_hw, D).
    acc = lax.dot_general(
        x,
        w_ref[...],
        dimension_numbers=(((0,), (1,)), ((), ())),
        preferred_element_type=jnp.float32,
    )
    o_ref[0] = (acc + b_ref[...]).astype(o_ref.dtype)


def _choose_token_tile(HW, B, C, D, in_itemsize, out_itemsize, vmem_capacity):
    """Largest lane-dense token tile whose buffers fit the per-chip VMEM."""
    budget = int(vmem_capacity) * 3 // 4              # leave compiler headroom
    resident = C * D * in_itemsize + D * 4 + (2 << 20)  # weight + f32 bias + slack
    per_tok = 2 * (C * in_itemsize + D * out_itemsize)  # double-buffered in+out
    max_tile = max((budget - resident) // per_tok, 128)

    # Keep >= 2 grid steps so both v7x TensorCores get work when B == 1.
    if B == 1 and HW >= 256 and HW % 256 == 0:
        max_tile = min(max_tile, HW // 2)

    if HW <= max_tile:
        return HW  # full spatial extent (block == full dim is always legal)

    # Largest multiple of 128 that divides HW and fits the budget (no ragged
    # edge -> no padded reads / masked writebacks).
    t = (max_tile // 128) * 128
    while t >= 128:
        if HW % t == 0:
            return t
        t -= 128

    # HW has no suitable divisor: fall back to a ragged multiple-of-128 tile;
    # Pallas pads the read of the last block and masks its writeback.
    return min((max_tile // 128) * 128, HW)


def segformer_mlp(hidden_states, weight, bias, *, compute_dtype=None):
    """SegformerMLP forward.

    hidden_states: (B, C, H, W)
    weight:        (D, C)   (nn.Linear layout, NOT transposed)
    bias:          (D,)
    compute_dtype: optional streaming dtype (e.g. jnp.bfloat16 for inference);
                   MXU accumulation and bias stay f32.
    returns:       (B, H*W, D) in compute_dtype (defaults to input dtype).
    """
    B, C, H, W = hidden_states.shape
    D = weight.shape[0]
    HW = H * W

    if compute_dtype is None:
        compute_dtype = hidden_states.dtype

    # Free reshape (no data movement): (B, C, H, W) -> (B, C, H*W).
    x3d = hidden_states.reshape(B, C, HW).astype(compute_dtype)
    w = weight.astype(compute_dtype)                 # (D, C), kept as-is
    b2d = bias.reshape(1, D).astype(jnp.float32)     # pre-cast once

    in_it = jnp.dtype(compute_dtype).itemsize
    out_it = in_it

    # Generation-aware VMEM capacity (v5e/v6e: 128 MiB, v7x: 64 MiB).
    try:
        vmem_cap = int(pltpu.get_tpu_info().vmem_capacity_bytes)
    except Exception:
        vmem_cap = 64 << 20  # conservative fallback (v7x-sized)

    tile = _choose_token_tile(HW, B, C, D, in_it, out_it, vmem_cap)
    n_hw = pl.cdiv(HW, tile)
    grid = (B, n_hw)

    # Actual VMEM need for the chosen tile (double-buffered streamed tiles +
    # resident weight/bias + headroom); request exactly that, capped safely.
    blk_in = C * tile * in_it
    blk_out = tile * D * out_it
    resident = C * D * in_it + D * 4
    need = 2 * (blk_in + blk_out) + resident + (2 << 20)
    vmem_limit = int(min(max(need, 16 << 20), vmem_cap * 4 // 5))

    out = pl.pallas_call(
        _mlp_kernel,
        out_shape=jax.ShapeDtypeStruct((B, HW, D), compute_dtype),
        grid_spec=pltpu.PrefetchScalarGridSpec(
            num_scalar_prefetch=0,
            grid=grid,
            in_specs=[
                # Streamed activation tile: (1, C, tile); tokens in lanes.
                pl.BlockSpec((1, C, tile), lambda b, j: (b, 0, j)),
                # Full (D, C) weight, resident across the grid.
                pl.BlockSpec((D, C), lambda b, j: (0, 0)),
                # Bias, resident.
                pl.BlockSpec((1, D), lambda b, j: (0, 0)),
            ],
            out_specs=pl.BlockSpec((1, tile, D), lambda b, j: (b, j, 0)),
        ),
        compiler_params=pltpu.CompilerParams(
            dimension_semantics=("parallel", "parallel"),
            vmem_limit_bytes=vmem_limit,
        ),
    )(x3d, w, b2d)

    return out


if __name__ == "__main__":
    # Small shapes consistent with the module: B=2, C(input_dim)=4, H=W=16,
    # decoder_hidden_size=32.
    B, C, H, W, D = 2, 4, 16, 16, 32

    key = jax.random.PRNGKey(0)
    k_x, k_w, k_b = jax.random.split(key, 3)

    x = jax.random.normal(k_x, (B, C, H, W), dtype=jnp.float32)
    # Deterministic "nn.Linear(C, D)" parameters: weight (D, C), bias (D,)
    weight = jax.random.normal(k_w, (D, C), dtype=jnp.float32) * 0.1
    bias = jax.random.normal(k_b, (D,), dtype=jnp.float32) * 0.1

    # Pure-JAX reference of the PyTorch forward.
    ref = jnp.transpose(x.reshape(B, C, H * W), (0, 2, 1)) @ weight.T + bias

    # f32 path (matches PyTorch reference tightly).
    out = jax.block_until_ready(segformer_mlp(x, weight, bias))
    assert out.shape == (B, H * W, D)
    assert jnp.allclose(out, ref, atol=1e-5, rtol=1e-5)

    # bf16 streaming path (bandwidth-bound win for inference); f32 accumulate.
    out_bf16 = jax.block_until_ready(
        segformer_mlp(x, weight, bias, compute_dtype=jnp.bfloat16)
    )
    assert out_bf16.shape == (B, H * W, D)
    assert jnp.allclose(out_bf16.astype(jnp.float32), ref, atol=5e-2, rtol=5e-2)

    print("KERNEL_OK")
</pallas_src>

<mosaic_0001>
module attributes {stable_mosaic.version = 11 : i64} {
  func.func @_mlp_kernel(%arg0: i32, %arg1: i32, %arg2: memref<1x4x256xf32, #tpu.memory_space<vmem>>, %arg3: memref<32x4xf32, #tpu.memory_space<vmem>>, %arg4: memref<1x32xf32, #tpu.memory_space<vmem>>, %arg5: memref<1x256x32xf32, #tpu.memory_space<vmem>>) attributes {dimension_semantics = [#tpu.dimension_semantics<parallel>, #tpu.dimension_semantics<parallel>], iteration_bounds = array<i64: 2, 1>, scalar_prefetch = 0 : i64, scratch_operands = 0 : i64, tpu.core_type = #tpu.core_type<tc>, window_params = [{transform_indices = @transform_0, window_bounds = array<i64: 1, 4, 256>}, {pipeline_mode = #tpu.pipeline_mode<synchronous>, transform_indices = @transform_1, window_bounds = array<i64: 32, 4>}, {pipeline_mode = #tpu.pipeline_mode<synchronous>, transform_indices = @transform_2, window_bounds = array<i64: 1, 32>}, {transform_indices = @transform_3, window_bounds = array<i64: 1, 256, 32>}]} {
    %c0 = arith.constant 0 : index
    %c0_0 = arith.constant 0 : index
    %c0_1 = arith.constant 0 : index
    %0 = vector.load %arg2[%c0, %c0_0, %c0_1] : memref<1x4x256xf32, #tpu.memory_space<vmem>>, vector<1x4x256xf32>
    %1 = vector.shape_cast %0 : vector<1x4x256xf32> to vector<4x256xf32>
    %c0_2 = arith.constant 0 : index
    %c0_3 = arith.constant 0 : index
    %2 = vector.load %arg3[%c0_2, %c0_3] : memref<32x4xf32, #tpu.memory_space<vmem>>, vector<32x4xf32>
    %cst = arith.constant dense<0.000000e+00> : vector<256x32xf32>
    %3 = tpu.matmul %1, %2, %cst {dimension_numbers = #tpu.dot_dimension_numbers<[0], [1], [1], [0], [0, 1, 1, 0], [], []>} : vector<4x256xf32>, vector<32x4xf32>, vector<256x32xf32> -> vector<256x32xf32>
    %c0_4 = arith.constant 0 : index
    %c0_5 = arith.constant 0 : index
    %4 = vector.load %arg4[%c0_4, %c0_5] : memref<1x32xf32, #tpu.memory_space<vmem>>, vector<1x32xf32>
    %5 = vector.broadcast %4 : vector<1x32xf32> to vector<256x32xf32>
    %6 = arith.addf %3, %5 : vector<256x32xf32>
    %c0_6 = arith.constant 0 : index
    %c0_7 = arith.constant 0 : index
    %c0_8 = arith.constant 0 : index
    %7 = vector.load %arg5[%c0_6, %c0_7, %c0_8] : memref<1x256x32xf32, #tpu.memory_space<vmem>>, vector<1x256x32xf32>
    %8 = vector.shape_cast %7 : vector<1x256x32xf32> to vector<256x32xf32>
    %9 = vector.shape_cast %6 : vector<256x32xf32> to vector<1x256x32xf32>
    tpu.vector_store %arg5[%c0_6, %c0_7, %c0_8], %9 {strides = array<i32>} : memref<1x256x32xf32, #tpu.memory_space<vmem>>, vector<1x256x32xf32>,
    return
  }
  func.func @transform_0(%arg0: i32, %arg1: i32) -> (i32, i32, i32) {
    %c0_i32 = arith.constant 0 : i32
    %c0_i32_0 = arith.constant 0 : i32
    return %arg0, %c0_i32, %arg1 : i32, i32, i32
  }
  func.func @transform_1(%arg0: i32, %arg1: i32) -> (i32, i32) {
    %c0_i32 = arith.constant 0 : i32
    %c0_i32_0 = arith.constant 0 : i32
    %c0_i32_1 = arith.constant 0 : i32
    return %c0_i32, %c0_i32_0 : i32, i32
  }
  func.func @transform_2(%arg0: i32, %arg1: i32) -> (i32, i32) {
    %c0_i32 = arith.constant 0 : i32
    %c0_i32_0 = arith.constant 0 : i32
    %c0_i32_1 = arith.constant 0 : i32
    return %c0_i32, %c0_i32_0 : i32, i32
  }
  func.func @transform_3(%arg0: i32, %arg1: i32) -> (i32, i32, i32) {
    %c0_i32 = arith.constant 0 : i32
    %c0_i32_0 = arith.constant 0 : i32
    return %arg0, %arg1, %c0_i32 : i32, i32, i32
  }
}

</mosaic_0001>

<bundles_post_ra>
// kernel: tpu_custom_call.1
= control target key start
LH: loop header
LB: loop body
LE: loop exit
PB: predicated region body
PF: predicated region fallthrough
CT: control target
= control target key end

     0   :  { %s762_s12 = smov 0   ;;  %s764_s13 = smov 0   ;;  %s962_s0 = inlined_call_operand.vmem [shape: f32[2,4,256], index: 0, kind: input, shape index: {}]   ;;  %s963_s1 = inlined_call_operand.vmem [shape: f32[32,4], index: 1, kind: input, shape index: {}]   ;;  %s964_s2 = inlined_call_operand.vmem [shape: f32[1,32], index: 2, kind: input, shape index: {}]   ;;  %s965_s3 = inlined_call_operand.vmem [shape: f32[2,256,32], index: 3, kind: output, shape index: {}]  }
   0x1   :  { %s766_s14 = smov 0  }
   0x2 LB: > { %s25_s15 = sadd.s32 1, %s736_s13  ;;  %p635_p0 = scmp.ge.s32.totalorder %s740_s14, 1  ;;  %s740_s14 = sphi %s766_s14, %s13_s14   ;;  %s736_s13 = sphi %s764_s13, %s967_s13   ;;  %s732_s12 = sphi %s762_s12, %s966_s12  }
   0x3   : > { %p27_p1 = scmp.ge.s32.totalorder %s25_s15, 2  ;;  %p158_p2 = scmp.lt.s32.totalorder %s740_s14, 3 }
   0x5   : > { %s969_s15 = smov (%p27_p1, %s25_s15), 0  ;;  %p159_p3 = pnand %p635_p0, %p158_p2 }
   0x6   : > { %p191_p4 = scmp.lt.s32.totalorder (!%p159_p3), %s732_s12, 1 }
   0x7   : > { %162 = sbr.rel (%p159_p3) target bundleno = 566 (0x236), region = 32 }
   0xc   : > { %s971_s12 = smov (!%p191_p4, %s732_s12), 1  ;;  %v214_v2 = vld [vmem:[%s963_s1 + $0x18] sm:$0xff]  ;;  %vm289_vm0 = vcmask 31744   ;;  %v213_v3 = vld [vmem:[%s963_s1 + $0x10] sm:$0xff]  ;;  %v212_v4 = vld [vmem:[%s963_s1 + $0x8] sm:$0xff]  ;;  %vm511_vm1 = vcmask 261120  }
   0xd   : > { %s678_s16 = sshll.u32 %s971_s12, 3  ;;  %681 = vmatpush.xpose.msk.msra.mxu2 %vm289_vm0, %v214_v2  ;;  %682 = vmatpush.xpose.msk.msra.mxu3 %vm289_vm0, %v214_v2  ;;  %v211_v5 = vld [vmem:[%s963_s1] sm:$0xff]  ;;  %s679_s28 = sshll.u32 %s971_s12, 8 }
   0xe   : > { %s198_s19 = scalar_lea.vmem %s962_s0, %s678_s16  ;;  %640 = vmatpush.xpose.msk.msra.mxu0 %vm289_vm0, %v214_v2  ;;  %680 = vmatpush.xpose.msk.msra.mxu1 %vm289_vm0, %v214_v2  ;;  %v835_v24 = vld [vmem:[%s964_s2] ss:$0 sm:$0xff]  ;;  %s840_s6 = scalar_lea.vmem %s965_s3, %s679_s28 }
   0xf   : > { %v210_v0 = vld [vmem:[%s198_s19] sm:$0xff] }
  0x10   : > { %220 = vst [vmem:[#allocation1] ss:$2 sm:$0xff] %v210_v0 }
  0x11   : > { %684 = vmatpush.xpose.msk.msra.mxu2 %vm289_vm0, %v213_v3  ;;  %685 = vmatpush.xpose.msk.msra.mxu3 %vm289_vm0, %v213_v3 }
  0x12   : > { %641 = vmatpush.xpose.msk.msra.mxu0 %vm289_vm0, %v213_v3  ;;  %683 = vmatpush.xpose.msk.msra.mxu1 %vm289_vm0, %v213_v3 }
  0x15   : > { %687 = vmatpush.xpose.msk.msra.mxu2 %vm289_vm0, %v212_v4  ;;  %688 = vmatpush.xpose.msk.msra.mxu3 %vm289_vm0, %v212_v4 }
  0x16   : > { %642 = vmatpush.xpose.msk.msra.mxu0 %vm289_vm0, %v212_v4  ;;  %686 = vmatpush.xpose.msk.msra.mxu1 %vm289_vm0, %v212_v4 }
  0x17   : > { %v222_v1 = vld.sshfl [vmem:[#allocation1 + $0x8] sm:$0xff pattern:$0x75316420]  ;;  %v221_v6 = vld.sshfl [vmem:[#allocation1] sm:$0xff pattern:$0x75316420] }
  0x18   : > { %257 = vxpose.xlu0.b32.start.end [1/1] (short) %v222_v1, 128 }
  0x19   : > { %690 = vmatpush.xpose.msk.msra.mxu2 %vm289_vm0, %v211_v5  ;;  %691 = vmatpush.xpose.msk.msra.mxu3 %vm289_vm0, %v211_v5 }
  0x1a   : > { %643 = vmatpush.xpose.msk.msra.mxu0 %vm289_vm0, %v211_v5  ;;  %689 = vmatpush.xpose.msk.msra.mxu1 %vm289_vm0, %v211_v5 }
  0x98   : > { %225 = vxpose.xlu0.b32.start.end [1/1] (short) %v221_v6, 128 }
  0xbc   : > { %v273_v7 = vpop.trf.xlu0 }
  0xbd   : > { %660 = vmatmul.msk.f32.vlgmr.msra.gmra.mxu2 %vm289_vm0, %v273_v7 }
  0xc4   : > { %v274_v8 = vpop.trf.xlu0 }
  0xc5   : > { %661 = vmatmul.msk.f32.gmra.mxu2 %vm289_vm0, %v274_v8 }
  0xcc   : > { %v275_v9 = vpop.trf.xlu0 }
  0xcd   : > { %662 = vmatmul.msk.f32.gmra.mxu2 %vm289_vm0, %v275_v9 }
  0xd4   : > { %v276_v10 = vpop.trf.xlu0 }
  0xd5   : > { %663 = vmatmul.msk.f32.gmra.mxu2 %vm289_vm0, %v276_v10 }
  0xdc   : > { %v277_v11 = vpop.trf.xlu0 }
  0xdd   : > { %664 = vmatmul.msk.f32.gmra.mxu2 %vm289_vm0, %v277_v11 }
  0xe4   : > { %v278_v12 = vpop.trf.xlu0 }
  0xe5   : > { %665 = vmatmul.msk.f32.gmra.mxu2 %vm289_vm0, %v278_v12 }
  0xec   : > { %v279_v13 = vpop.trf.xlu0 }
  0xed   : > { %666 = vmatmul.msk.f32.gmra.mxu2 %vm289_vm0, %v279_v13 }
  0xf4   : > { %v280_v14 = vpop.trf.xlu0 }
  0xf5   : > { %667 = vmatmul.msk.f32.gmra.mxu2 %vm289_vm0, %v280_v14 }
  0xfc   : > { %v281_v15 = vpop.trf.xlu0 }
  0xfd   : > { %668 = vmatmul.msk.f32.vlgmr.msra.gmra.mxu3 %vm289_vm0, %v281_v15 }
 0x104   : > { %v282_v16 = vpop.trf.xlu0 }
 0x105   : > { %669 = vmatmul.msk.f32.gmra.mxu3 %vm289_vm0, %v282_v16 }
 0x10c   : > { %v283_v17 = vpop.trf.xlu0 }
 0x10d   : > { %670 = vmatmul.msk.f32.gmra.mxu3 %vm289_vm0, %v283_v17 }
 0x114   : > { %v284_v18 = vpop.trf.xlu0 }
 0x115   : > { %671 = vmatmul.msk.f32.gmra.mxu3 %vm289_vm0, %v284_v18 }
 0x11c   : > { %v285_v19 = vpop.trf.xlu0 }
 0x11d   : > { %672 = vmatmul.msk.f32.gmra.mxu3 %vm289_vm0, %v285_v19 }
 0x124   : > { %v286_v20 = vpop.trf.xlu0 }
 0x125   : > { %673 = vmatmul.msk.f32.gmra.mxu3 %vm289_vm0, %v286_v20 }
 0x12c   : > { %v287_v21 = vpop.trf.xlu0 }
 0x12d   : > { %674 = vmatmul.msk.f32.gmra.mxu3 %vm289_vm0, %v287_v21 }
 0x134   : > { %v288_v22 = vpop.trf.xlu0 }
 0x135   : > { %675 = vmatmul.msk.f32.gmra.mxu3 %vm289_vm0, %v288_v22 }
 0x13c   : > { %v241_v23 = vpop.trf.xlu0 }
 0x13d   : > { %644 = vmatmul.msk.f32.vlgmr.msra.gmra.mxu0 %vm289_vm0, %v241_v23 }
 0x140   : > { %v463_v25 = vpop.f32.mrf.mxu2 }
 0x141   : > { %v464_v26 = vadd.f32 %v835_v24, %v463_v25 }
 0x143   : > { %528 = vst.msk [vmem:[%s840_s6 + $0x80] sm:$0xff] %vm511_vm1, %v464_v26 }
 0x144   : > { %v242_v27 = vpop.trf.xlu0 }
 0x145   : > { %645 = vmatmul.msk.f32.gmra.mxu0 %vm289_vm0, %v242_v27 }
 0x148   : > { %v466_v28 = vpop.f32.mrf.mxu2 }
 0x149   : > { %v467_v29 = vadd.f32 %v835_v24, %v466_v28 }
 0x14b   : > { %529 = vst.msk [vmem:[%s840_s6 + $0x88] sm:$0xff] %vm511_vm1, %v467_v29 }
 0x14c   : > { %v243_v30 = vpop.trf.xlu0 }
 0x14d   : > { %646 = vmatmul.msk.f32.gmra.mxu0 %vm289_vm0, %v243_v30 }
 0x150   : > { %v469_v31 = vpop.f32.mrf.mxu2 }
 0x151   : > { %v470_v32 = vadd.f32 %v835_v24, %v469_v31 }
 0x153   : > { %530 = vst.msk [vmem:[%s840_s6 + $0x90] sm:$0xff] %vm511_vm1, %v470_v32 }
 0x154   : > { %v244_v33 = vpop.trf.xlu0 }
 0x155   : > { %647 = vmatmul.msk.f32.gmra.mxu0 %vm289_vm0, %v244_v33 }
 0x158   : > { %v472_v34 = vpop.f32.mrf.mxu2 }
 0x159   : > { %v473_v35 = vadd.f32 %v835_v24, %v472_v34 }
 0x15b   : > { %531 = vst.msk [vmem:[%s840_s6 + $0x98] sm:$0xff] %vm511_vm1, %v473_v35 }
 0x15c   : > { %v245_v36 = vpop.trf.xlu0 }
 0x15d   : > { %648 = vmatmul.msk.f32.gmra.mxu0 %vm289_vm0, %v245_v36 }
 0x160   : > { %v475_v37 = vpop.f32.mrf.mxu2 }
 0x161   : > { %v476_v38 = vadd.f32 %v835_v24, %v475_v37 }
 0x163   : > { %532 = vst.msk [vmem:[%s840_s6 + $0xa0] sm:$0xff] %vm511_vm1, %v476_v38 }
 0x164   : > { %v246_v39 = vpop.trf.xlu0 }
 0x165   : > { %649 = vmatmul.msk.f32.gmra.mxu0 %vm289_vm0, %v246_v39 }
 0x168   : > { %v478_v40 = vpop.f32.mrf.mxu2 }
 0x169   : > { %v479_v41 = vadd.f32 %v835_v24, %v478_v40 }
 0x16b   : > { %533 = vst.msk [vmem:[%s840_s6 + $0xa8] sm:$0xff] %vm511_vm1, %v479_v41 }
 0x16c   : > { %v247_v42 = vpop.trf.xlu0 }
 0x16d   : > { %650 = vmatmul.msk.f32.gmra.mxu0 %vm289_vm0, %v247_v42 }
 0x170   : > { %v481_v43 = vpop.f32.mrf.mxu2 }
 0x171   : > { %v482_v44 = vadd.f32 %v835_v24, %v481_v43 }
 0x173   : > { %534 = vst.msk [vmem:[%s840_s6 + $0xb0] sm:$0xff] %vm511_vm1, %v482_v44 }
 0x174   : > { %v248_v45 = vpop.trf.xlu0 }
 0x175   : > { %651 = vmatmul.msk.f32.gmra.mxu0 %vm289_vm0, %v248_v45 }
 0x178   : > { %v484_v46 = vpop.f32.mrf.mxu2 }
 0x179   : > { %v485_v47 = vadd.f32 %v835_v24, %v484_v46 }
 0x17b   : > { %535 = vst.msk [vmem:[%s840_s6 + $0xb8] sm:$0xff] %vm511_vm1, %v485_v47 }
 0x17c   : > { %v249_v48 = vpop.trf.xlu0 }
 0x17d   : > { %652 = vmatmul.msk.f32.vlgmr.msra.gmra.mxu1 %vm289_vm0, %v249_v48 }
 0x180   : > { %v487_v49 = vpop.f32.mrf.mxu3 }
 0x181   : > { %v488_v50 = vadd.f32 %v835_v24, %v487_v49 }
 0x183   : > { %536 = vst.msk [vmem:[%s840_s6 + $0xc0] sm:$0xff] %vm511_vm1, %v488_v50 }
 0x184   : > { %v250_v51 = vpop.trf.xlu0 }
 0x185   : > { %653 = vmatmul.msk.f32.gmra.mxu1 %vm289_vm0, %v250_v51 }
 0x188   : > { %v490_v52 = vpop.f32.mrf.mxu3 }
 0x189   : > { %v491_v53 = vadd.f32 %v835_v24, %v490_v52 }
 0x18b   : > { %537 = vst.msk [vmem:[%s840_s6 + $0xc8] sm:$0xff] %vm511_vm1, %v491_v53 }
 0x18c   : > { %v251_v54 = vpop.trf.xlu0 }
 0x18d   : > { %654 = vmatmul.msk.f32.gmra.mxu1 %vm289_vm0, %v251_v54 }
 0x190   : > { %v493_v55 = vpop.f32.mrf.mxu3 }
 0x191   : > { %v494_v56 = vadd.f32 %v835_v24, %v493_v55 }
 0x193   : > { %538 = vst.msk [vmem:[%s840_s6 + $0xd0] sm:$0xff] %vm511_vm1, %v494_v56 }
 0x194   : > { %v252_v57 = vpop.trf.xlu0 }
 0x195   : > { %655 = vmatmul.msk.f32.gmra.mxu1 %vm289_vm0, %v252_v57 }
 0x198   : > { %v496_v58 = vpop.f32.mrf.mxu3 }
 0x199   : > { %v497_v59 = vadd.f32 %v835_v24, %v496_v58 }
 0x19b   : > { %539 = vst.msk [vmem:[%s840_s6 + $0xd8] sm:$0xff] %vm511_vm1, %v497_v59 }
 0x19c   : > { %v253_v60 = vpop.trf.xlu0 }
 0x19d   : > { %656 = vmatmul.msk.f32.gmra.mxu1 %vm289_vm0, %v253_v60 }
 0x1a0   : > { %v499_v61 = vpop.f32.mrf.mxu3 }
 0x1a1   : > { %v500_v62 = vadd.f32 %v835_v24, %v499_v61 }
 0x1a3   : > { %540 = vst.msk [vmem:[%s840_s6 + $0xe0] sm:$0xff] %vm511_vm1, %v500_v62 }
 0x1a4   : > { %v254_v63 = vpop.trf.xlu0 }
 0x1a5   : > { %657 = vmatmul.msk.f32.gmra.mxu1 %vm289_vm0, %v254_v63 }
 0x1a8   : > { %v502_v0 = vpop.f32.mrf.mxu3 }
 0x1a9   : > { %v503_v1 = vadd.f32 %v835_v24, %v502_v0 }
 0x1ab   : > { %541 = vst.msk [vmem:[%s840_s6 + $0xe8] sm:$0xff] %vm511_vm1, %v503_v1 }
 0x1ac   : > { %v255_v2 = vpop.trf.xlu0 }
 0x1ad   : > { %658 = vmatmul.msk.f32.gmra.mxu1 %vm289_vm0, %v255_v2 }
 0x1b0   : > { %v505_v3 = vpop.f32.mrf.mxu3 }
 0x1b1   : > { %v506_v4 = vadd.f32 %v835_v24, %v505_v3 }
 0x1b3   : > { %542 = vst.msk [vmem:[%s840_s6 + $0xf0] sm:$0xff] %vm511_vm1, %v506_v4 }
 0x1b4   : > { %v256_v5 = vpop.trf.xlu0 }
 0x1b5   : > { %659 = vmatmul.msk.f32.gmra.mxu1 %vm289_vm0, %v256_v5 }
 0x1b8   : > { %v508_v6 = vpop.f32.mrf.mxu3 }
 0x1b9   : > { %v509_v7 = vadd.f32 %v835_v24, %v508_v6 }
 0x1ba   : > { %v415_v8 = vpop.f32.mrf.mxu0 }
 0x1bb   : > { %543 = vst.msk [vmem:[%s840_s6 + $0xf8] sm:$0xff] %vm511_vm1, %v509_v7  ;;  %v416_v9 = vadd.f32 %v835_v24, %v415_v8 }
 0x1bd   : > { %512 = vst.msk [vmem:[%s840_s6] sm:$0xff] %vm511_vm1, %v416_v9 }
 0x1c2   : > { %v418_v10 = vpop.f32.mrf.mxu0 }
 0x1c3   : > { %v419_v11 = vadd.f32 %v835_v24, %v418_v10 }
 0x1c5   : > { %513 = vst.msk [vmem:[%s840_s6 + $0x8] sm:$0xff] %vm511_vm1, %v419_v11 }
 0x1ca   : > { %v421_v12 = vpop.f32.mrf.mxu0 }
 0x1cb   : > { %v422_v13 = vadd.f32 %v835_v24, %v421_v12 }
 0x1cd   : > { %514 = vst.msk [vmem:[%s840_s6 + $0x10] sm:$0xff] %vm511_vm1, %v422_v13 }
 0x1d2   : > { %v424_v14 = vpop.f32.mrf.mxu0 }
 0x1d3   : > { %v425_v15 = vadd.f32 %v835_v24, %v424_v14 }
 0x1d5   : > { %515 = vst.msk [vmem:[%s840_s6 + $0x18] sm:$0xff] %vm511_vm1, %v425_v15 }
 0x1da   : > { %v427_v16 = vpop.f32.mrf.mxu0 }
 0x1db   : > { %v428_v17 = vadd.f32 %v835_v24, %v427_v16 }
 0x1dd   : > { %516 = vst.msk [vmem:[%s840_s6 + $0x20] sm:$0xff] %vm511_vm1, %v428_v17 }
 0x1e2   : > { %v430_v18 = vpop.f32.mrf.mxu0 }
 0x1e3   : > { %v431_v19 = vadd.f32 %v835_v24, %v430_v18 }
 0x1e5   : > { %517 = vst.msk [vmem:[%s840_s6 + $0x28] sm:$0xff] %vm511_vm1, %v431_v19 }
 0x1ea   : > { %v433_v20 = vpop.f32.mrf.mxu0 }
 0x1eb   : > { %v434_v21 = vadd.f32 %v835_v24, %v433_v20 }
 0x1ed   : > { %518 = vst.msk [vmem:[%s840_s6 + $0x30] sm:$0xff] %vm511_vm1, %v434_v21 }
 0x1f2   : > { %v436_v22 = vpop.f32.mrf.mxu0 }
 0x1f3   : > { %v437_v23 = vadd.f32 %v835_v24, %v436_v22 }
 0x1f5   : > { %519 = vst.msk [vmem:[%s840_s6 + $0x38] sm:$0xff] %vm511_vm1, %v437_v23 }
 0x1fa   : > { %v439_v25 = vpop.f32.mrf.mxu1 }
 0x1fb   : > { %v440_v26 = vadd.f32 %v835_v24, %v439_v25 }
 0x1fd   : > { %520 = vst.msk [vmem:[%s840_s6 + $0x40] sm:$0xff] %vm511_vm1, %v440_v26 }
 0x202   : > { %v442_v27 = vpop.f32.mrf.mxu1 }
 0x203   : > { %v443_v28 = vadd.f32 %v835_v24, %v442_v27 }
 0x205   : > { %521 = vst.msk [vmem:[%s840_s6 + $0x48] sm:$0xff] %vm511_vm1, %v443_v28 }
 0x20a   : > { %v445_v29 = vpop.f32.mrf.mxu1 }
 0x20b   : > { %v446_v30 = vadd.f32 %v835_v24, %v445_v29 }
 0x20d   : > { %522 = vst.msk [vmem:[%s840_s6 + $0x50] sm:$0xff] %vm511_vm1, %v446_v30 }
 0x212   : > { %v448_v31 = vpop.f32.mrf.mxu1 }
 0x213   : > { %v449_v32 = vadd.f32 %v835_v24, %v448_v31 }
 0x215   : > { %523 = vst.msk [vmem:[%s840_s6 + $0x58] sm:$0xff] %vm511_vm1, %v449_v32 }
 0x21a   : > { %v451_v33 = vpop.f32.mrf.mxu1 }
 0x21b   : > { %v452_v34 = vadd.f32 %v835_v24, %v451_v33 }
 0x21d   : > { %524 = vst.msk [vmem:[%s840_s6 + $0x60] sm:$0xff] %vm511_vm1, %v452_v34 }
 0x222   : > { %v454_v35 = vpop.f32.mrf.mxu1 }
 0x223   : > { %v455_v36 = vadd.f32 %v835_v24, %v454_v35 }
 0x225   : > { %525 = vst.msk [vmem:[%s840_s6 + $0x68] sm:$0xff] %vm511_vm1, %v455_v36 }
 0x22a   : > { %v457_v37 = vpop.f32.mrf.mxu1 }
 0x22b   : > { %v458_v38 = vadd.f32 %v835_v24, %v457_v37 }
 0x22d   : > { %526 = vst.msk [vmem:[%s840_s6 + $0x70] sm:$0xff] %vm511_vm1, %v458_v38 }
 0x232   : > { %v460_v39 = vpop.f32.mrf.mxu1 }
 0x233   : > { %v461_v40 = vadd.f32 %v835_v24, %v460_v39 }
 0x235   : > { %527 = vst.msk [vmem:[%s840_s6 + $0x78] sm:$0xff] %vm511_vm1, %v461_v40 }
 0x236 PF: > { %s13_s14 = sadd.s32 1, %s740_s14   ;;  %s966_s12 = smov %s736_s13 }
 0x237   : > { %p10_p5 = scmp.ge.s32.totalorder %s13_s14, 4   ;;  %s967_s13 = smov %s969_s15 }
 0x239   :  { %12 = sbr.rel (!%p10_p5) target bundleno = 2 (0x2), region = 62 }

</bundles_post_ra>
